<compile_context>
chip_gen: v7x
topology: tpu7x:2x2x1
jax: 0.10.0
libtpu: 0.0.40
codegen_flags: <defaults>
</compile_context>

<pallas_src>
import functools
import math

import jax
import jax.numpy as jnp
from jax.experimental import pallas as pl
from jax.experimental.pallas import tpu as pltpu

EPS = 1e-5

_MIN_TILE_BYTES = 512 * 1024     # tile-byte floor when splitting into >1 step
_MIN_SPLIT_BYTES = 128 * 1024    # min per-core tile worth splitting across 2 TCs


def _dot01(a, ind_bf16):
    """a @ ind for f32 `a` and a 0/1 indicator `ind` (bf16), f32-accumulated.

    bf16 hi/lo split keeps ~2^-16 relative accuracy (ample for rtol=1e-4) while
    using the MXU's native bf16 path; the MXU is otherwise idle in this
    memory-bound kernel.
    """
    a_hi = a.astype(jnp.bfloat16)
    a_lo = (a - a_hi.astype(jnp.float32)).astype(jnp.bfloat16)
    return (jnp.dot(a_hi, ind_bf16, preferred_element_type=jnp.float32)
            + jnp.dot(a_lo, ind_bf16, preferred_element_type=jnp.float32))


def _multivar_ln_kernel(x_ref, w_ref, b_ref, seg_ref, segt_ref, o_ref, *, inv_d):
    # x_ref:   (TB, C) rows of the flattened input (lane-dense, C = G * D)
    # w_ref:   (1, C)  per-channel affine scale (implicit broadcast)
    # b_ref:   (1, C)  per-channel affine shift (implicit broadcast)
    # seg_ref: (C, Gp) 0/1 group indicator (Gp = G padded to a multiple of 8;
    #                  padded columns are all-zero -> inert)
    # segt_ref:(Gp, C) its transpose (padded rows all-zero -> inert)
    x = x_ref[...].astype(jnp.float32)                     # (TB, C)
    seg = seg_ref[...]                                     # (C, Gp) bf16
    segt = segt_ref[...]                                   # (Gp, C) bf16
    inv_d_f = jnp.float32(inv_d)

    # One-pass segmented stats: both reductions depend only on x.
    sum_x = _dot01(x, seg)                                 # (TB, Gp)
    sum_x2 = _dot01(x * x, seg)                            # (TB, Gp)

    mean = sum_x * inv_d_f                                 # (TB, Gp)
    # Biased variance via E[x^2] - mean^2 on the narrow tensor; clamp guards
    # the tiny-variance/large-mean cancellation corner and padded rows.
    var = jnp.maximum(sum_x2 * inv_d_f - mean * mean, 0.0)
    inv_std = jax.lax.rsqrt(var + EPS)                     # (TB, Gp), EUP
    mean_scaled = mean * inv_std                           # (TB, Gp)

    # Broadcast the two narrow per-group coefficients back to channels (MXU).
    inv_b = _dot01(inv_std, segt)                          # (TB, C)
    ms_b = _dot01(mean_scaled, segt)                       # (TB, C)

    w = w_ref[...].astype(jnp.float32)                     # (1, C)
    b = b_ref[...].astype(jnp.float32)
    o_ref[...] = ((x * inv_b - ms_b) * w + b).astype(o_ref.dtype)


def _chip_params():
    """(target tile bytes, scoped-VMEM cap we may request, 2-TensorCore chip?)."""
    kind = ""
    try:
        kind = (jax.devices()[0].device_kind or "").lower()
    except Exception:
        pass
    # Conservative defaults (v5e-class: 16 MiB scoped / 128 MiB physical VMEM).
    target_bytes, vmem_cap, two_tc = 1 << 20, 96 << 20, False
    if "v7" in kind:
        target_bytes, vmem_cap, two_tc = 1 << 20, 48 << 20, True   # 64 MiB/TC
    elif "v6" in kind:
        target_bytes, vmem_cap, two_tc = 2 << 20, 100 << 20, False
    elif "v4" in kind or "v5p" in kind or "v5 p" in kind:
        target_bytes, vmem_cap, two_tc = 1 << 20, 96 << 20, True
    return target_bytes, vmem_cap, two_tc


def _select_block_rows(batch, num_channels, itemsize, *, target_bytes, align, two_tc):
    """Rows per grid step: balanced steps, ~target_bytes of x per step, with a
    ~512 KiB tile-byte floor; even (>=2) step count on 2-TensorCore chips."""
    bytes_per_row = num_channels * itemsize
    total_bytes = batch * bytes_per_row
    if batch <= align:
        return batch

    steps = max(1, int(round(total_bytes / float(target_bytes))))
    if steps > 1:
        steps = min(steps, max(1, total_bytes // _MIN_TILE_BYTES))

    if two_tc:
        if steps == 1 and total_bytes >= 2 * _MIN_SPLIT_BYTES:
            steps = 2
        elif steps > 1 and steps % 2 == 1:
            steps += 1

    if steps <= 1:
        return batch
    rows = -(-batch // steps)                       # balanced steps
    rows = ((rows + align - 1) // align) * align    # sublane-packing aligned
    return min(rows, batch)


def multivar_layer_norm(x, weight, bias, *, block_rows=None, vmem_limit_bytes=None):
    """GroupNorm(G, C) matching MultivarLayerNorm.forward.

    x: [B, *extra_dims, D]; weight/bias: any shape with C = prod(extra_dims)*D
    elements (flat [C] as stored by nn.GroupNorm, or [*extra_dims, D]).
    """
    shape = x.shape
    batch = shape[0]
    d = shape[-1]
    c = math.prod(shape[1:])
    g = c // d
    assert g * d == c, "last dim must be input_dims"

    x2d = x.reshape(batch, c)            # contiguous -> free reshape in XLA
    w2d = weight.reshape(1, c)
    b2d = bias.reshape(1, c)

    # 0/1 group-indicator matrices (exact in bf16), resident in VMEM. Padded
    # group columns/rows are all-zero, so they are inert.
    g_pad = max(8, ((g + 7) // 8) * 8)
    # TODO(synk): above a few thousand channels/groups the resident indicators
    # and the dense segmented matmul stop being free; block the indicator along
    # C or switch to a (TB*G, D)-tiled reduction for those configs.
    assert 2 * c * g_pad * 2 <= (8 << 20), "large C*G needs the blocked-indicator path"
    chan_group = jnp.arange(c, dtype=jnp.int32) // d                  # (C,)
    seg = (chan_group[:, None] == jnp.arange(g_pad, dtype=jnp.int32)[None, :])
    seg = seg.astype(jnp.bfloat16)                                    # (C, Gp)
    segt = seg.T                                                      # (Gp, C)

    itemsize = int(x.dtype.itemsize)
    # Sublane packing: 8 rows for 32-bit dtypes, 16 for bf16, 32 for int8/fp8.
    align = 8 * max(1, 4 // max(1, itemsize))
    target_bytes, vmem_cap, two_tc = _chip_params()

    if block_rows is None:
        tb = _select_block_rows(batch, c, itemsize, target_bytes=target_bytes,
                                align=align, two_tc=two_tc)
    else:
        tb = min(int(block_rows), batch)
        if tb != batch and tb % align != 0:
            tb = max(align, tb - tb % align)
            tb = batch if tb >= batch else tb

    # Clamp rows so the VMEM footprint (double-buffered in/out tiles + ~7 f32
    # tile-sized intermediates) stays within the generation cap.
    bytes_per_row_live = c * (4 * itemsize + 7 * 4)
    max_rows = max(align, (int(vmem_cap * 0.6) // bytes_per_row_live) // align * align)
    if max_rows < batch:
        tb = min(tb, max_rows)

    # Footprint-derived scoped-VMEM request, clamped to [32 MiB, generation cap].
    if vmem_limit_bytes is None:
        footprint = (4 * tb * c * itemsize            # double-buffered in + out
                     + 7 * tb * c * 4                 # live f32/bf16 intermediates
                     + 4 * c * g_pad * 2              # resident indicators
                     + (1 << 20))                     # params + slack
        vmem_limit_bytes = int(min(vmem_cap, max(int(footprint * 1.5), 32 << 20)))

    grid = (pl.cdiv(batch, tb),)
    kernel = functools.partial(_multivar_ln_kernel, inv_d=1.0 / d)

    cost = pl.CostEstimate(
        flops=int(batch * (16 * c * g_pad + 12 * c)),
        transcendentals=int(batch * g_pad),
        bytes_accessed=int(2 * batch * c * itemsize + 2 * c * 4 + 2 * c * g_pad * 2),
    )

    out2d = pl.pallas_call(
        kernel,
        out_shape=jax.ShapeDtypeStruct((batch, c), x.dtype),
        grid_spec=pltpu.PrefetchScalarGridSpec(
            num_scalar_prefetch=0,
            grid=grid,
            in_specs=[
                pl.BlockSpec((tb, c), lambda i: (i, 0)),      # x rows
                pl.BlockSpec((1, c), lambda i: (0, 0)),       # weight (resident)
                pl.BlockSpec((1, c), lambda i: (0, 0)),       # bias   (resident)
                pl.BlockSpec((c, g_pad), lambda i: (0, 0)),   # indicator
                pl.BlockSpec((g_pad, c), lambda i: (0, 0)),   # indicator^T
            ],
            out_specs=pl.BlockSpec((tb, c), lambda i: (i, 0)),
        ),
        compiler_params=pltpu.CompilerParams(
            dimension_semantics=("parallel",),
            vmem_limit_bytes=vmem_limit_bytes,
        ),
        cost_estimate=cost,
    )(x2d, w2d, b2d, seg, segt)
    return out2d.reshape(shape)


def multivar_layer_norm_ref(x, weight, bias):
    """Pure-JAX reference matching nn.GroupNorm(G, G*D) on the flattened input."""
    shape = x.shape
    batch, d = shape[0], shape[-1]
    c = math.prod(shape[1:])
    g = c // d
    xf = x.reshape(batch, g, d).astype(jnp.float32)
    mean = jnp.mean(xf, axis=-1, keepdims=True)
    var = jnp.mean((xf - mean) ** 2, axis=-1, keepdims=True)
    y = (xf - mean) * jax.lax.rsqrt(var + EPS)
    w = weight.reshape(1, g, d).astype(jnp.float32)
    b = bias.reshape(1, g, d).astype(jnp.float32)
    return (y * w + b).astype(x.dtype).reshape(shape)


if __name__ == "__main__":
    # Module config: input_dims=32, extra_dims=[4] -> G=4 parallel nets, D=32.
    key = jax.random.PRNGKey(0)
    kx, kw, kb, kx2 = jax.random.split(key, 4)

    B, G, D = 2, 4, 32
    x = jax.random.normal(kx, (B, G, D), dtype=jnp.float32)
    # GroupNorm default init is weight=1, bias=0; use deterministic random
    # affine params so the affine path is actually exercised.
    weight = 1.0 + 0.1 * jax.random.normal(kw, (G * D,), dtype=jnp.float32)
    bias = 0.1 * jax.random.normal(kb, (G * D,), dtype=jnp.float32)

    out = multivar_layer_norm(x, weight, bias)
    out = jax.block_until_ready(out)
    ref = multivar_layer_norm_ref(x, weight, bias)
    assert out.shape == x.shape and out.dtype == x.dtype
    assert jnp.allclose(out, ref, rtol=1e-4, atol=1e-4), "mismatch vs reference (small batch)"

    # Larger batch with the automatic tile picker.
    B2 = 200
    x2 = jax.random.normal(kx2, (B2, G, D), dtype=jnp.float32)
    out2 = jax.block_until_ready(multivar_layer_norm(x2, weight, bias))
    ref2 = multivar_layer_norm_ref(x2, weight, bias)
    assert jnp.allclose(out2, ref2, rtol=1e-4, atol=1e-4), "mismatch vs reference (large batch)"

    # Forced multi-step grid with a partial trailing block (exercises pipeline
    # masking and the "parallel" batch axis across grid steps).
    out3 = jax.block_until_ready(multivar_layer_norm(x2, weight, bias, block_rows=64))
    assert jnp.allclose(out3, ref2, rtol=1e-4, atol=1e-4), "mismatch vs reference (multi-step)"

    print("KERNEL_OK")
</pallas_src>

<mosaic_0001>
module attributes {stable_mosaic.version = 11 : i64} {
  func.func @_multivar_ln_kernel(%arg0: i32, %arg1: memref<2x128xf32, #tpu.memory_space<vmem>>, %arg2: memref<1x128xf32, #tpu.memory_space<vmem>>, %arg3: memref<1x128xf32, #tpu.memory_space<vmem>>, %arg4: memref<128x8xbf16, #tpu.memory_space<vmem>>, %arg5: memref<8x128xbf16, #tpu.memory_space<vmem>>, %arg6: memref<2x128xf32, #tpu.memory_space<vmem>>) attributes {dimension_semantics = [#tpu.dimension_semantics<parallel>], iteration_bounds = array<i64: 1>, scalar_prefetch = 0 : i64, scratch_operands = 0 : i64, tpu.core_type = #tpu.core_type<tc>, window_params = [{transform_indices = @transform_0, window_bounds = array<i64: 2, 128>}, {pipeline_mode = #tpu.pipeline_mode<synchronous>, transform_indices = @transform_1, window_bounds = array<i64: 1, 128>}, {pipeline_mode = #tpu.pipeline_mode<synchronous>, transform_indices = @transform_2, window_bounds = array<i64: 1, 128>}, {pipeline_mode = #tpu.pipeline_mode<synchronous>, transform_indices = @transform_3, window_bounds = array<i64: 128, 8>}, {pipeline_mode = #tpu.pipeline_mode<synchronous>, transform_indices = @transform_4, window_bounds = array<i64: 8, 128>}, {transform_indices = @transform_5, window_bounds = array<i64: 2, 128>}]} {
    %c0 = arith.constant 0 : index
    %c0_0 = arith.constant 0 : index
    %0 = vector.load %arg1[%c0, %c0_0] : memref<2x128xf32, #tpu.memory_space<vmem>>, vector<2x128xf32>
    %c0_1 = arith.constant 0 : index
    %c0_2 = arith.constant 0 : index
    %1 = vector.load %arg4[%c0_1, %c0_2] : memref<128x8xbf16, #tpu.memory_space<vmem>>, vector<128x8xbf16>
    %c0_3 = arith.constant 0 : index
    %c0_4 = arith.constant 0 : index
    %2 = vector.load %arg5[%c0_3, %c0_4] : memref<8x128xbf16, #tpu.memory_space<vmem>>, vector<8x128xbf16>
    %3 = arith.truncf %0 : vector<2x128xf32> to vector<2x128xbf16>
    %4 = arith.extf %3 : vector<2x128xbf16> to vector<2x128xf32>
    %5 = arith.subf %0, %4 : vector<2x128xf32>
    %6 = arith.truncf %5 : vector<2x128xf32> to vector<2x128xbf16>
    %cst = arith.constant dense<0.000000e+00> : vector<2x8xf32>
    %7 = tpu.matmul %3, %1, %cst {dimension_numbers = #tpu.dot_dimension_numbers<[1], [0], [0], [1], [0, 0, 1, 1], [], []>} : vector<2x128xbf16>, vector<128x8xbf16>, vector<2x8xf32> -> vector<2x8xf32>
    %cst_5 = arith.constant dense<0.000000e+00> : vector<2x8xf32>
    %8 = tpu.matmul %6, %1, %cst_5 {dimension_numbers = #tpu.dot_dimension_numbers<[1], [0], [0], [1], [0, 0, 1, 1], [], []>} : vector<2x128xbf16>, vector<128x8xbf16>, vector<2x8xf32> -> vector<2x8xf32>
    %9 = arith.addf %7, %8 : vector<2x8xf32>
    %10 = arith.mulf %0, %0 : vector<2x128xf32>
    %11 = arith.truncf %10 : vector<2x128xf32> to vector<2x128xbf16>
    %12 = arith.extf %11 : vector<2x128xbf16> to vector<2x128xf32>
    %13 = arith.subf %10, %12 : vector<2x128xf32>
    %14 = arith.truncf %13 : vector<2x128xf32> to vector<2x128xbf16>
    %cst_6 = arith.constant dense<0.000000e+00> : vector<2x8xf32>
    %15 = tpu.matmul %11, %1, %cst_6 {dimension_numbers = #tpu.dot_dimension_numbers<[1], [0], [0], [1], [0, 0, 1, 1], [], []>} : vector<2x128xbf16>, vector<128x8xbf16>, vector<2x8xf32> -> vector<2x8xf32>
    %cst_7 = arith.constant dense<0.000000e+00> : vector<2x8xf32>
    %16 = tpu.matmul %14, %1, %cst_7 {dimension_numbers = #tpu.dot_dimension_numbers<[1], [0], [0], [1], [0, 0, 1, 1], [], []>} : vector<2x128xbf16>, vector<128x8xbf16>, vector<2x8xf32> -> vector<2x8xf32>
    %17 = arith.addf %15, %16 : vector<2x8xf32>
    %cst_8 = arith.constant 3.125000e-02 : f32
    %18 = vector.broadcast %cst_8 : f32 to vector<2x8xf32>
    %19 = arith.mulf %9, %18 : vector<2x8xf32>
    %cst_9 = arith.constant 3.125000e-02 : f32
    %20 = vector.broadcast %cst_9 : f32 to vector<2x8xf32>
    %21 = arith.mulf %17, %20 : vector<2x8xf32>
    %22 = arith.mulf %19, %19 : vector<2x8xf32>
    %23 = arith.subf %21, %22 : vector<2x8xf32>
    %cst_10 = arith.constant 0.000000e+00 : f32
    %24 = vector.broadcast %cst_10 : f32 to vector<2x8xf32>
    %25 = arith.maximumf %23, %24 : vector<2x8xf32>
    %cst_11 = arith.constant 9.99999974E-6 : f32
    %26 = vector.broadcast %cst_11 : f32 to vector<2x8xf32>
    %27 = arith.addf %25, %26 : vector<2x8xf32>
    %28 = math.rsqrt %27 : vector<2x8xf32>
    %29 = arith.mulf %19, %28 : vector<2x8xf32>
    %30 = arith.truncf %28 : vector<2x8xf32> to vector<2x8xbf16>
    %31 = arith.extf %30 : vector<2x8xbf16> to vector<2x8xf32>
    %32 = arith.subf %28, %31 : vector<2x8xf32>
    %33 = arith.truncf %32 : vector<2x8xf32> to vector<2x8xbf16>
    %cst_12 = arith.constant dense<0.000000e+00> : vector<2x128xf32>
    %34 = tpu.matmul %30, %2, %cst_12 {dimension_numbers = #tpu.dot_dimension_numbers<[1], [0], [0], [1], [0, 0, 1, 1], [], []>} : vector<2x8xbf16>, vector<8x128xbf16>, vector<2x128xf32> -> vector<2x128xf32>
    %cst_13 = arith.constant dense<0.000000e+00> : vector<2x128xf32>
    %35 = tpu.matmul %33, %2, %cst_13 {dimension_numbers = #tpu.dot_dimension_numbers<[1], [0], [0], [1], [0, 0, 1, 1], [], []>} : vector<2x8xbf16>, vector<8x128xbf16>, vector<2x128xf32> -> vector<2x128xf32>
    %36 = arith.addf %34, %35 : vector<2x128xf32>
    %37 = arith.truncf %29 : vector<2x8xf32> to vector<2x8xbf16>
    %38 = arith.extf %37 : vector<2x8xbf16> to vector<2x8xf32>
    %39 = arith.subf %29, %38 : vector<2x8xf32>
    %40 = arith.truncf %39 : vector<2x8xf32> to vector<2x8xbf16>
    %cst_14 = arith.constant dense<0.000000e+00> : vector<2x128xf32>
    %41 = tpu.matmul %37, %2, %cst_14 {dimension_numbers = #tpu.dot_dimension_numbers<[1], [0], [0], [1], [0, 0, 1, 1], [], []>} : vector<2x8xbf16>, vector<8x128xbf16>, vector<2x128xf32> -> vector<2x128xf32>
    %cst_15 = arith.constant dense<0.000000e+00> : vector<2x128xf32>
    %42 = tpu.matmul %40, %2, %cst_15 {dimension_numbers = #tpu.dot_dimension_numbers<[1], [0], [0], [1], [0, 0, 1, 1], [], []>} : vector<2x8xbf16>, vector<8x128xbf16>, vector<2x128xf32> -> vector<2x128xf32>
    %43 = arith.addf %41, %42 : vector<2x128xf32>
    %c0_16 = arith.constant 0 : index
    %c0_17 = arith.constant 0 : index
    %44 = vector.load %arg2[%c0_16, %c0_17] : memref<1x128xf32, #tpu.memory_space<vmem>>, vector<1x128xf32>
    %c0_18 = arith.constant 0 : index
    %c0_19 = arith.constant 0 : index
    %45 = vector.load %arg3[%c0_18, %c0_19] : memref<1x128xf32, #tpu.memory_space<vmem>>, vector<1x128xf32>
    %46 = arith.mulf %0, %36 : vector<2x128xf32>
    %47 = arith.subf %46, %43 : vector<2x128xf32>
    %48 = vector.broadcast %44 : vector<1x128xf32> to vector<2x128xf32>
    %49 = arith.mulf %47, %48 : vector<2x128xf32>
    %50 = vector.broadcast %45 : vector<1x128xf32> to vector<2x128xf32>
    %51 = arith.addf %49, %50 : vector<2x128xf32>
    %c0_20 = arith.constant 0 : index
    %c0_21 = arith.constant 0 : index
    %52 = vector.load %arg6[%c0_20, %c0_21] : memref<2x128xf32, #tpu.memory_space<vmem>>, vector<2x128xf32>
    tpu.vector_store %arg6[%c0_20, %c0_21], %51 {strides = array<i32>} : memref<2x128xf32, #tpu.memory_space<vmem>>, vector<2x128xf32>,
    return
  }
  func.func @transform_0(%arg0: i32) -> (i32, i32) {
    %c0_i32 = arith.constant 0 : i32
    %c0_i32_0 = arith.constant 0 : i32
    return %arg0, %c0_i32 : i32, i32
  }
  func.func @transform_1(%arg0: i32) -> (i32, i32) {
    %c0_i32 = arith.constant 0 : i32
    %c0_i32_0 = arith.constant 0 : i32
    %c0_i32_1 = arith.constant 0 : i32
    return %c0_i32, %c0_i32_0 : i32, i32
  }
  func.func @transform_2(%arg0: i32) -> (i32, i32) {
    %c0_i32 = arith.constant 0 : i32
    %c0_i32_0 = arith.constant 0 : i32
    %c0_i32_1 = arith.constant 0 : i32
    return %c0_i32, %c0_i32_0 : i32, i32
  }
  func.func @transform_3(%arg0: i32) -> (i32, i32) {
    %c0_i32 = arith.constant 0 : i32
    %c0_i32_0 = arith.constant 0 : i32
    %c0_i32_1 = arith.constant 0 : i32
    return %c0_i32, %c0_i32_0 : i32, i32
  }
  func.func @transform_4(%arg0: i32) -> (i32, i32) {
    %c0_i32 = arith.constant 0 : i32
    %c0_i32_0 = arith.constant 0 : i32
    %c0_i32_1 = arith.constant 0 : i32
    return %c0_i32, %c0_i32_0 : i32, i32
  }
  func.func @transform_5(%arg0: i32) -> (i32, i32) {
    %c0_i32 = arith.constant 0 : i32
    %c0_i32_0 = arith.constant 0 : i32
    return %arg0, %c0_i32 : i32, i32
  }
}

</mosaic_0001>

<bundles_post_ra>
// kernel: tpu_custom_call.1
= control target key start
LH: loop header
LB: loop body
LE: loop exit
PB: predicated region body
PF: predicated region fallthrough
CT: control target
= control target key end

     0   :  { %v698_v1 = vmov 0.0   ;;  %vm699_vm0 = vmmov 0   ;;  %s839_s0 = inlined_call_operand.vmem [shape: f32[2,128], index: 0, kind: input, shape index: {}]   ;;  %s840_s1 = inlined_call_operand.vmem [shape: f32[1,128], index: 1, kind: input, shape index: {}]   ;;  %s841_s2 = inlined_call_operand.vmem [shape: f32[1,128], index: 2, kind: input, shape index: {}]   ;;  %s842_s3 = inlined_call_operand.vmem [shape: bf16[128,8], index: 3, kind: input, shape index: {}]   ;;  %s843_s4 = inlined_call_operand.vmem [shape: bf16[8,128], index: 4, kind: input, shape index: {}]   ;;  %s844_s5 = inlined_call_operand.hbm [shape: f32[2,128], index: 5, kind: output, shape index: {}]  }
   0x1   :  { %v664_v0 = vld [vmem:[%s842_s3] sm:$0xff]   ;;  %541 = vmatprep.subr.bf16.mxu0 %v698_v1  ;;  %581 = vmatprep.subr.bf16.mxu1 %v698_v1  ;;  %v665_v2 = vld [vmem:[%s842_s3 + $0x8] sm:$0xff]   ;;  %v666_v3 = vld [vmem:[%s842_s3 + $0x10] sm:$0xff]  }
   0x2   :  { %542 = vmatpush3.bf16.msra.mxu0 %v664_v0  ;;  %582 = vmatpush3.bf16.msra.mxu1 %v664_v0 }
   0x3   :  { %543 = vmatprep.subr.bf16.mxu0 %v698_v1  ;;  %583 = vmatprep.subr.bf16.mxu1 %v698_v1 }
   0x4   :  { %557 = vmatprep.mubr.msk.bf16.mxu0 %vm699_vm0, %v698_v1  ;;  %597 = vmatprep.mubr.msk.bf16.mxu1 %vm699_vm0, %v698_v1 }
   0x6   :  { %544 = vmatpush3.bf16.msra.mxu0 %v665_v2  ;;  %584 = vmatpush3.bf16.msra.mxu1 %v665_v2 }
   0x7   :  { %545 = vmatprep.subr.bf16.mxu0 %v698_v1  ;;  %585 = vmatprep.subr.bf16.mxu1 %v698_v1 }
   0x8   :  { %10 = vsyncpa [#allocation3], 0  ;;  %v667_v4 = vld [vmem:[%s842_s3 + $0x18] sm:$0xff]   ;;  %v756_v5 = vld [vmem:[%s839_s0] sm:$0x3]  ;;  %vm273_vm1 = vcmask 1043456  }
   0x9   :  { %v172_v6 = vmul.f32 %v756_v5, %v756_v5  ;;  %v668_v7 = vld [vmem:[%s842_s3 + $0x20] sm:$0xff]   ;;  %v40_v8 = vpack.c.bf16 %v756_v5, %v756_v5  ;;  %v669_v10 = vld [vmem:[%s842_s3 + $0x28] sm:$0xff]   ;;  %v670_v13 = vld [vmem:[%s842_s3 + $0x30] sm:$0xff]   ;;  %vm269_vm2 = vcmask 64512   ;;  %s700_s14 = smov [#allocation2]  }
   0xa   :  { %546 = vmatpush3.bf16.msra.mxu0 %v666_v3  ;;  %586 = vmatpush3.bf16.msra.mxu1 %v666_v3  ;;  %v671_v16 = vld [vmem:[%s842_s3 + $0x38] sm:$0xff]   ;;  %v39_v19 = vld [vmem:[%s843_s4] sm:$0xf]  ;;  %s475_s15 = sshll.u32 %s700_s14, 4  ;;  %s476_s15 = int_to_ptr.vmem [resolvable:$true] %s475_s15 }
   0xb   :  { %547 = vmatprep.subr.bf16.mxu0 %v698_v1  ;;  %587 = vmatprep.subr.bf16.mxu1 %v698_v1  ;;  %v173_v9 = vpack.c.bf16 %v172_v6, %v172_v6  ;;  %v41_v11 = vunpack.c.l.bf16 %v40_v8  ;;  %v275_v20 = vsel %vm273_vm1, %v39_v19, 0  ;;  %v495_v50 = vld [vmem:[%s840_s1] ss:$0 sm:$0xff]  ;;  %s674_s16 = scalar_lea.vmem %s476_s15, 32  ;;  %p679_p1 = scmp.lt.s32.totalorder %s476_s15, %s476_s15 }
   0xc   :  { %v496_v55 = vld [vmem:[%s841_s2] ss:$0 sm:$0xff]  ;;  %p675_p0 = scmp.ne.s32.totalorder %s476_s15, %s674_s16  ;;  %p680_p2 = scmp.lt.s32.totalorder %s674_s16, %s674_s16 }
   0xd   :  { %v174_v12 = vunpack.c.l.bf16 %v173_v9  ;;  %v42_v14 = vsub.f32 %v756_v5, %v41_v11 }
   0xe   :  { %548 = vmatpush3.bf16.msra.mxu0 %v667_v4  ;;  %588 = vmatpush3.bf16.msra.mxu1 %v667_v4  ;;  %p681_p3 = por %p680_p2, %p679_p1 }
   0xf   :  { %549 = vmatprep.subr.bf16.mxu0 %v698_v1  ;;  %589 = vmatprep.subr.bf16.mxu1 %v698_v1  ;;  %v175_v15 = vsub.f32 %v172_v6, %v174_v12  ;;  %v43_v17 = vpack.c.bf16 %v42_v14, %v42_v14 }
  0x10   :  { %p682_p4 = pnand %p681_p3, %p675_p0 }
  0x11   :  { %v176_v18 = vpack.c.bf16 %v175_v15, %v175_v15 }
  0x12   :  { %550 = vmatpush3.bf16.msra.mxu0 %v668_v7  ;;  %590 = vmatpush3.bf16.msra.mxu1 %v668_v7 }
  0x13   :  { %551 = vmatprep.subr.bf16.mxu0 %v698_v1  ;;  %591 = vmatprep.subr.bf16.mxu1 %v698_v1 }
  0x16   :  { %552 = vmatpush3.bf16.msra.mxu0 %v669_v10  ;;  %592 = vmatpush3.bf16.msra.mxu1 %v669_v10 }
  0x17   :  { %553 = vmatprep.subr.bf16.mxu0 %v698_v1  ;;  %593 = vmatprep.subr.bf16.mxu1 %v698_v1 }
  0x1a   :  { %554 = vmatpush3.bf16.msra.mxu0 %v670_v13  ;;  %594 = vmatpush3.bf16.msra.mxu1 %v670_v13 }
  0x1b   :  { %555 = vmatprep.subr.bf16.mxu0 %v698_v1  ;;  %595 = vmatprep.subr.bf16.mxu1 %v698_v1 }
  0x1e   :  { %556 = vmatpush3.bf16.msra.mxu0 %v671_v16  ;;  %596 = vmatpush3.bf16.msra.mxu1 %v671_v16 }
  0x1f   :  { %561 = vmatprep.subr.bf16.mxu0 %v698_v1  ;;  %601 = vmatprep.subr.bf16.mxu1 %v698_v1 }
  0x21   :  { %558 = vmatmul.mubr.bf16.vlgmr.msra.gmra.mrb[0].mxu0 %v43_v17  ;;  %598 = vmatmul.mubr.bf16.vlgmr.msra.gmra.mrb[0].mxu1 %v176_v18 }
  0x22   :  { %562 = vmatpush3.bf16.msra.mxu0 %v664_v0  ;;  %602 = vmatpush3.bf16.msra.mxu1 %v664_v0 }
  0x23   :  { %563 = vmatprep.subr.bf16.mxu0 %v698_v1  ;;  %603 = vmatprep.subr.bf16.mxu1 %v698_v1 }
  0x24   :  { %577 = vmatprep.mubr.msk.bf16.mxu0 %vm699_vm0, %v698_v1  ;;  %617 = vmatprep.mubr.msk.bf16.mxu1 %vm699_vm0, %v698_v1 }
  0x26   :  { %564 = vmatpush3.bf16.msra.mxu0 %v665_v2  ;;  %604 = vmatpush3.bf16.msra.mxu1 %v665_v2 }
  0x27   :  { %565 = vmatprep.subr.bf16.mxu0 %v698_v1  ;;  %605 = vmatprep.subr.bf16.mxu1 %v698_v1 }
  0x2a   :  { %566 = vmatpush3.bf16.msra.mxu0 %v666_v3  ;;  %606 = vmatpush3.bf16.msra.mxu1 %v666_v3 }
  0x2b   :  { %567 = vmatprep.subr.bf16.mxu0 %v698_v1  ;;  %607 = vmatprep.subr.bf16.mxu1 %v698_v1 }
  0x2e   :  { %568 = vmatpush3.bf16.msra.mxu0 %v667_v4  ;;  %608 = vmatpush3.bf16.msra.mxu1 %v667_v4 }
  0x2f   :  { %569 = vmatprep.subr.bf16.mxu0 %v698_v1  ;;  %609 = vmatprep.subr.bf16.mxu1 %v698_v1 }
  0x32   :  { %570 = vmatpush3.bf16.msra.mxu0 %v668_v7  ;;  %610 = vmatpush3.bf16.msra.mxu1 %v668_v7 }
  0x33   :  { %571 = vmatprep.subr.bf16.mxu0 %v698_v1  ;;  %611 = vmatprep.subr.bf16.mxu1 %v698_v1 }
  0x36   :  { %572 = vmatpush3.bf16.msra.mxu0 %v669_v10  ;;  %612 = vmatpush3.bf16.msra.mxu1 %v669_v10 }
  0x37   :  { %573 = vmatprep.subr.bf16.mxu0 %v698_v1  ;;  %613 = vmatprep.subr.bf16.mxu1 %v698_v1 }
  0x3a   :  { %574 = vmatpush3.bf16.msra.mxu0 %v670_v13  ;;  %614 = vmatpush3.bf16.msra.mxu1 %v670_v13 }
  0x3b   :  { %575 = vmatprep.subr.bf16.mxu0 %v698_v1  ;;  %615 = vmatprep.subr.bf16.mxu1 %v698_v1 }
  0x3e   :  { %576 = vmatpush3.bf16.msra.mxu0 %v671_v16  ;;  %616 = vmatpush3.bf16.msra.mxu1 %v671_v16 }
  0x3f   :  { %621 = vmatprep.subr.bf16.mxu0 %v698_v1  ;;  %633 = vmatprep.subr.bf16.mxu1 %v698_v1 }
  0x41   :  { %578 = vmatmul.mubr.bf16.vlgmr.msra.gmra.mrb[0].mxu0 %v40_v8  ;;  %618 = vmatmul.mubr.bf16.vlgmr.msra.gmra.mrb[0].mxu1 %v173_v9 }
  0x42   :  { %623 = vmatprep.mubr.msk.bf16.mxu0 %vm699_vm0, %v698_v1  ;;  %635 = vmatprep.mubr.msk.bf16.mxu1 %vm699_vm0, %v698_v1 }
  0x43   :  { %622 = vmatpush3.bf16.msra.mxu0 %v275_v20  ;;  %634 = vmatpush3.bf16.msra.mxu1 %v275_v20 }
  0x44   :  { %627 = vmatprep.subr.bf16.mxu0 %v698_v1  ;;  %639 = vmatprep.subr.bf16.mxu1 %v698_v1 }
 0x114   :  { %v166_v21 = vpop.f32.mrb[0].mxu0  ;;  %v251_v22 = vpop.f32.mrb[0].mxu1 }
 0x115   :  { %v257_v23 = vmul.f32 0.03125, %v166_v21  ;;  %v579_v24 = vpop.f32.mrb[1].mxu0  ;;  %v619_v25 = vpop.f32.mrb[1].mxu1  ;;  %v258_v29 = vmul.f32 0.03125, %v251_v22 }
 0x116   :  { %v169_v26 = vpop.f32.mrb[2].mxu0  ;;  %v254_v27 = vpop.f32.mrb[2].mxu1 }
 0x117   :  { %v259_v28 = vmul.f32 %v257_v23, %v257_v23  ;;  %v580_v30 = vpop.f32.mrb[3].mxu0  ;;  %v620_v31 = vpop.f32.mrb[3].mxu1 }
 0x119   :  { %v260_v32 = vsub.f32 %v258_v29, %v259_v28 }
 0x11b   :  { %v261_v33 = vmax.f32 %v260_v32, 0.0 }
 0x11d   :  { %v262_v34 = vadd.f32 1e-05, %v261_v33 }
 0x11f   :  { %672 = vrsqrt.f32 %v262_v34 }
 0x129   :  { %v673_v35 = vpop.eup %672 }
 0x12a   :  { %v265_v36 = vpack.c.bf16 %v673_v35, %v673_v35  ;;  %v264_v37 = vmul.f32 %v673_v35, %v257_v23 }
 0x12c   :  { %v266_v38 = vunpack.c.l.bf16 %v265_v36  ;;  %v360_v39 = vpack.c.bf16 %v264_v37, %v264_v37 }
 0x12e   :  { %v267_v40 = vsub.f32 %v673_v35, %v266_v38  ;;  %v361_v41 = vunpack.c.l.bf16 %v360_v39 }
 0x130   :  { %v268_v42 = vpack.c.bf16 %v267_v40, %v267_v40  ;;  %v362_v43 = vsub.f32 %v264_v37, %v361_v41 }
 0x132   :  { %624 = vmatmul.mubr.msk.bf16.vlgmr.msra.gmra.mrb[4].mxu0 %vm269_vm2, %v268_v42  ;;  %v363_v44 = vpack.c.bf16 %v362_v43, %v362_v43 }
 0x133   :  { %628 = vmatpush3.bf16.msra.mxu0 %v275_v20  ;;  %629 = vmatprep.mubr.msk.bf16.mxu0 %vm699_vm0, %v698_v1 }
 0x134   :  { %636 = vmatmul.mubr.msk.bf16.vlgmr.msra.gmra.mrb[4].mxu1 %vm269_vm2, %v363_v44 }
 0x135   :  { %640 = vmatpush3.bf16.msra.mxu1 %v275_v20  ;;  %641 = vmatprep.mubr.msk.bf16.mxu1 %vm699_vm0, %v698_v1 }
 0x13e   :  { %630 = vmatmul.mubr.msk.bf16.vlgmr.msra.gmra.mrb[4].mxu0 %vm269_vm2, %v265_v36 }
 0x140   :  { %642 = vmatmul.mubr.msk.bf16.vlgmr.msra.gmra.mrb[4].mxu1 %vm269_vm2, %v360_v39 }
 0x211   :  { %v354_v45 = vpop.f32.mrb[4].mxu0 }
 0x212   :  { %v452_v46 = vmul.f32 %v354_v45, %v756_v5  ;;  %v631_v47 = vpop.f32.mrb[5].mxu0 }
 0x213   :  { %v357_v48 = vpop.f32.mrb[6].mxu0  ;;  %v444_v49 = vpop.f32.mrb[4].mxu1 }
 0x214   :  { %v453_v51 = vsub.f32 %v452_v46, %v444_v49  ;;  %v632_v52 = vpop.f32.mrb[7].mxu0  ;;  %v643_v53 = vpop.f32.mrb[5].mxu1 }
 0x215   :  { %v447_v54 = vpop.f32.mrb[6].mxu1 }
 0x216   :  { %v460_v56 = vmul.f32 %v495_v50, %v453_v51  ;;  %v644_v57 = vpop.f32.mrb[7].mxu1 }
 0x218   :  { %v467_v58 = vadd.f32 %v496_v55, %v460_v56 }
 0x21a   :  { %468 = vst [vmem:[#allocation2] sm:$0x3] %v467_v58 }
 0x21b   :  { %685 = shalt.err (!%p682_p4)
}
 0x21c   :  { %s686_s18 = scalar_lea.hbm %s844_s5, 32 }
 0x21d   :  { %p687_p5 = scmp.ne.s32.totalorder %s844_s5, %s686_s18  ;;  %p690_p6 = scmp.lt.u32.totalorder %s686_s18, %s844_s5 }
 0x21f   :  { %p692_p7 = pnand %p690_p6, %p687_p5 }
 0x221   :  { %695 = shalt.err (!%p692_p7)
}
 0x222   :  { %478 = dma.vmem_to_hbm [thread:$0]  %s476_s15, 32, %s844_s5, [#allocation3]  }
 0x223   :  { %696 = dma.done.wait [#allocation3], 32  }
 0x224   :  { %697 = vsyncadd [#allocation3], 4294967264 }
 0x225   :  { %482 = vsyncpa [#allocation3], 1 }

</bundles_post_ra>
